<compile_context>
chip_gen: v5e
topology: v5e:2x2
jax: 0.10.0
libtpu: 0.0.40
codegen_flags: <defaults>
</compile_context>

<pallas_src>
import math

import jax
import jax.numpy as jnp
from jax.experimental import pallas as pl
from jax.experimental.pallas import tpu as pltpu

LANE = 128        # TPU lane width; every feature dim is zero-padded to this.
HIDDEN = 16       # hidden_dim1 = hidden_dim2 = hidden_dim3 = 16 (from the module)


def actor_kernel(x_ref, w_ref, b_ref, o_ref):
    # x_ref: [B, 128]        input, lanes >= input_dim are zero
    # w_ref: [4, 128, 128]   packed per-layer weights, stored [in, out], zero-padded
    # b_ref: [4, 128]        packed per-layer biases, zero-padded
    # o_ref: [B, 128]        softmax(dim=0) output; lanes >= output_dim are padding
    h = x_ref[...]

    # Three hidden layers with ReLU (static unroll; padded lanes stay exactly 0,
    # so they never contaminate the real columns downstream).
    for layer in range(3):
        h = jnp.dot(h, w_ref[layer], preferred_element_type=jnp.float32)
        h = jnp.maximum(h + b_ref[layer:layer + 1, :], 0.0)

    # Output layer + softmax over dim=0 (the batch axis), matching F.softmax(..., dim=0).
    # Softmax over axis 0 is column-wise, so padded columns compute independent junk
    # (uniform 1/B) that is sliced away outside the kernel.
    z = jnp.dot(h, w_ref[3], preferred_element_type=jnp.float32) + b_ref[3:4, :]
    z = z - jnp.max(z, axis=0, keepdims=True)
    e = jnp.exp(z)
    inv = pl.reciprocal(jnp.sum(e, axis=0, keepdims=True), approx=True)  # EUP vrcp
    o_ref[...] = e * inv


def pack_params(params):
    """Pack the 4 (w, b) pairs into one weight slab and one bias slab (2 DMAs)."""
    w_packed = jnp.zeros((4, LANE, LANE), jnp.float32)
    b_packed = jnp.zeros((4, LANE), jnp.float32)
    for i, (w, b) in enumerate(params):
        fi, fo = w.shape
        w_packed = w_packed.at[i, :fi, :fo].set(w)
        b_packed = b_packed.at[i, :fo].set(b.reshape(-1))
    return w_packed, b_packed


def actor_forward(x, packed_params, output_dim):
    w_packed, b_packed = packed_params
    batch, input_dim = x.shape

    # Lane-dense input slab (layout plumbing only; no compute moved to the wrapper).
    x_pad = jnp.zeros((batch, LANE), jnp.float32).at[:, :input_dim].set(x)

    flops = 2 * batch * (input_dim * HIDDEN + HIDDEN * HIDDEN
                         + HIDDEN * HIDDEN + HIDDEN * output_dim)
    bytes_accessed = 4 * (x_pad.size + w_packed.size + b_packed.size + batch * LANE)
    cost = pl.CostEstimate(flops=flops,
                           transcendentals=batch * output_dim,   # exp in softmax
                           bytes_accessed=bytes_accessed)

    vmem = pl.BlockSpec(memory_space=pltpu.MemorySpace.VMEM)
    out_padded = pl.pallas_call(
        actor_kernel,
        out_shape=jax.ShapeDtypeStruct((batch, LANE), jnp.float32),
        in_specs=[vmem, vmem, vmem],
        out_specs=vmem,
        cost_estimate=cost,
    )(x_pad, w_packed, b_packed)

    # Slice the true action distribution off the lane-dense output slab.
    return out_padded[:, :output_dim]


def xavier_uniform(key, fan_in, fan_out):
    # PyTorch xavier_uniform: U(-a, a), a = sqrt(6 / (fan_in + fan_out)).
    # Stored as [in, out] (transpose of PyTorch's [out, in]); bound is symmetric.
    a = math.sqrt(6.0 / (fan_in + fan_out))
    return jax.random.uniform(key, (fan_in, fan_out), jnp.float32, minval=-a, maxval=a)


def init_params(key, input_dim, output_dim):
    dims = [(input_dim, HIDDEN), (HIDDEN, HIDDEN), (HIDDEN, HIDDEN), (HIDDEN, output_dim)]
    keys = jax.random.split(key, 4)
    params = []
    for k, (fi, fo) in zip(keys, dims):
        w = xavier_uniform(k, fi, fo)
        b = jnp.zeros((1, fo), jnp.float32)   # nn.init.constant(bias, 0.0)
        params.append((w, b))
    return params


def reference_forward(x, params):
    (w1, b1), (w2, b2), (w3, b3), (w4, b4) = params
    h = jnp.maximum(x @ w1 + b1, 0.0)
    h = jnp.maximum(h @ w2 + b2, 0.0)
    h = jnp.maximum(h @ w3 + b3, 0.0)
    z = h @ w4 + b4
    return jax.nn.softmax(z, axis=0)


if __name__ == "__main__":
    key = jax.random.PRNGKey(0)
    k_param, k_x = jax.random.split(key)

    batch = 8
    input_dim = 32
    output_dim = 8

    params = init_params(k_param, input_dim, output_dim)
    packed = pack_params(params)
    x = jax.random.normal(k_x, (batch, input_dim), jnp.float32)

    out = actor_forward(x, packed, output_dim)
    out = jax.block_until_ready(out)

    ref = reference_forward(x, params)
    assert out.shape == (batch, output_dim)
    # Tolerance budget: approx EUP reciprocal has ~2^-12 (~2.4e-4) relative error
    # on values in (0, 1]; everything else is exact f32.
    assert jnp.allclose(out, ref, atol=5e-4, rtol=1e-3), "mismatch vs reference"

    print("KERNEL_OK")
</pallas_src>

<mosaic_0001>
module attributes {stable_mosaic.version = 11 : i64} {
  func.func @actor_kernel(%arg0: memref<8x128xf32, #tpu.memory_space<vmem>>, %arg1: memref<4x128x128xf32, #tpu.memory_space<vmem>>, %arg2: memref<4x128xf32, #tpu.memory_space<vmem>>, %arg3: memref<8x128xf32, #tpu.memory_space<vmem>>) attributes {dimension_semantics = [], scalar_prefetch = 0 : i64, scratch_operands = 0 : i64, tpu.core_type = #tpu.core_type<tc>} {
    %c0 = arith.constant 0 : index
    %c0_0 = arith.constant 0 : index
    %0 = vector.load %arg0[%c0, %c0_0] : memref<8x128xf32, #tpu.memory_space<vmem>>, vector<8x128xf32>
    %c0_1 = arith.constant 0 : index
    %c0_2 = arith.constant 0 : index
    %c0_3 = arith.constant 0 : index
    %1 = vector.load %arg1[%c0_1, %c0_2, %c0_3] : memref<4x128x128xf32, #tpu.memory_space<vmem>>, vector<1x128x128xf32>
    %2 = vector.shape_cast %1 : vector<1x128x128xf32> to vector<128x128xf32>
    %cst = arith.constant dense<0.000000e+00> : vector<8x128xf32>
    %3 = tpu.matmul %0, %2, %cst {dimension_numbers = #tpu.dot_dimension_numbers<[1], [0], [0], [1], [0, 0, 1, 1], [], []>} : vector<8x128xf32>, vector<128x128xf32>, vector<8x128xf32> -> vector<8x128xf32>
    %c0_4 = arith.constant 0 : index
    %c0_5 = arith.constant 0 : index
    %4 = vector.load %arg2[%c0_4, %c0_5] : memref<4x128xf32, #tpu.memory_space<vmem>>, vector<1x128xf32>
    %5 = vector.broadcast %4 : vector<1x128xf32> to vector<8x128xf32>
    %6 = arith.addf %3, %5 : vector<8x128xf32>
    %cst_6 = arith.constant 0.000000e+00 : f32
    %7 = vector.broadcast %cst_6 : f32 to vector<8x128xf32>
    %8 = arith.maximumf %6, %7 : vector<8x128xf32>
    %c1 = arith.constant 1 : index
    %c0_7 = arith.constant 0 : index
    %c0_8 = arith.constant 0 : index
    %9 = vector.load %arg1[%c1, %c0_7, %c0_8] : memref<4x128x128xf32, #tpu.memory_space<vmem>>, vector<1x128x128xf32>
    %10 = vector.shape_cast %9 : vector<1x128x128xf32> to vector<128x128xf32>
    %cst_9 = arith.constant dense<0.000000e+00> : vector<8x128xf32>
    %11 = tpu.matmul %8, %10, %cst_9 {dimension_numbers = #tpu.dot_dimension_numbers<[1], [0], [0], [1], [0, 0, 1, 1], [], []>} : vector<8x128xf32>, vector<128x128xf32>, vector<8x128xf32> -> vector<8x128xf32>
    %c1_10 = arith.constant 1 : index
    %c0_11 = arith.constant 0 : index
    %12 = vector.load %arg2[%c1_10, %c0_11] : memref<4x128xf32, #tpu.memory_space<vmem>>, vector<1x128xf32>
    %13 = vector.broadcast %12 : vector<1x128xf32> to vector<8x128xf32>
    %14 = arith.addf %11, %13 : vector<8x128xf32>
    %cst_12 = arith.constant 0.000000e+00 : f32
    %15 = vector.broadcast %cst_12 : f32 to vector<8x128xf32>
    %16 = arith.maximumf %14, %15 : vector<8x128xf32>
    %c2 = arith.constant 2 : index
    %c0_13 = arith.constant 0 : index
    %c0_14 = arith.constant 0 : index
    %17 = vector.load %arg1[%c2, %c0_13, %c0_14] : memref<4x128x128xf32, #tpu.memory_space<vmem>>, vector<1x128x128xf32>
    %18 = vector.shape_cast %17 : vector<1x128x128xf32> to vector<128x128xf32>
    %cst_15 = arith.constant dense<0.000000e+00> : vector<8x128xf32>
    %19 = tpu.matmul %16, %18, %cst_15 {dimension_numbers = #tpu.dot_dimension_numbers<[1], [0], [0], [1], [0, 0, 1, 1], [], []>} : vector<8x128xf32>, vector<128x128xf32>, vector<8x128xf32> -> vector<8x128xf32>
    %c2_16 = arith.constant 2 : index
    %c0_17 = arith.constant 0 : index
    %20 = vector.load %arg2[%c2_16, %c0_17] : memref<4x128xf32, #tpu.memory_space<vmem>>, vector<1x128xf32>
    %21 = vector.broadcast %20 : vector<1x128xf32> to vector<8x128xf32>
    %22 = arith.addf %19, %21 : vector<8x128xf32>
    %cst_18 = arith.constant 0.000000e+00 : f32
    %23 = vector.broadcast %cst_18 : f32 to vector<8x128xf32>
    %24 = arith.maximumf %22, %23 : vector<8x128xf32>
    %c3 = arith.constant 3 : index
    %c0_19 = arith.constant 0 : index
    %c0_20 = arith.constant 0 : index
    %25 = vector.load %arg1[%c3, %c0_19, %c0_20] : memref<4x128x128xf32, #tpu.memory_space<vmem>>, vector<1x128x128xf32>
    %26 = vector.shape_cast %25 : vector<1x128x128xf32> to vector<128x128xf32>
    %cst_21 = arith.constant dense<0.000000e+00> : vector<8x128xf32>
    %27 = tpu.matmul %24, %26, %cst_21 {dimension_numbers = #tpu.dot_dimension_numbers<[1], [0], [0], [1], [0, 0, 1, 1], [], []>} : vector<8x128xf32>, vector<128x128xf32>, vector<8x128xf32> -> vector<8x128xf32>
    %c3_22 = arith.constant 3 : index
    %c0_23 = arith.constant 0 : index
    %28 = vector.load %arg2[%c3_22, %c0_23] : memref<4x128xf32, #tpu.memory_space<vmem>>, vector<1x128xf32>
    %29 = vector.broadcast %28 : vector<1x128xf32> to vector<8x128xf32>
    %30 = arith.addf %27, %29 : vector<8x128xf32>
    %cst_24 = arith.constant dense<0xFF800000> : vector<128xf32>
    %31 = vector.multi_reduction <maximumf>, %30, %cst_24 [0] : vector<8x128xf32> to vector<128xf32>
    %32 = vector.shape_cast %31 : vector<128xf32> to vector<1x128xf32>
    %33 = vector.broadcast %32 : vector<1x128xf32> to vector<8x128xf32>
    %34 = arith.subf %30, %33 : vector<8x128xf32>
    %35 = math.exp %34 : vector<8x128xf32>
    %cst_25 = arith.constant dense<0.000000e+00> : vector<128xf32>
    %36 = vector.multi_reduction <add>, %35, %cst_25 [0] : vector<8x128xf32> to vector<128xf32>
    %37 = vector.shape_cast %36 : vector<128xf32> to vector<1x128xf32>
    %38 = tpu.reciprocal %37 {approx = true} : vector<1x128xf32> -> vector<1x128xf32>
    %39 = vector.broadcast %38 : vector<1x128xf32> to vector<8x128xf32>
    %40 = arith.mulf %35, %39 : vector<8x128xf32>
    %c0_26 = arith.constant 0 : index
    %c0_27 = arith.constant 0 : index
    %41 = vector.load %arg3[%c0_26, %c0_27] : memref<8x128xf32, #tpu.memory_space<vmem>>, vector<8x128xf32>
    tpu.vector_store %arg3[%c0_26, %c0_27], %40 {strides = array<i32>} : memref<8x128xf32, #tpu.memory_space<vmem>>, vector<8x128xf32>,
    return
  }
}

</mosaic_0001>

<bundles_post_ra>
// kernel: tpu_custom_call.1
= control target key start
LH: loop header
LB: loop body
LE: loop exit
PB: predicated region body
PF: predicated region fallthrough
CT: control target
= control target key end

     0   :  { %8 = vsyncpa [#allocation3], 0  ;;  %s407_s0 = inlined_call_operand.hbm [shape: f32[8,128], index: 0, kind: input, shape index: {}]   ;;  %s408_s1 = inlined_call_operand.hbm [shape: f32[4,128,128], index: 1, kind: input, shape index: {}]   ;;  %s409_s2 = inlined_call_operand.hbm [shape: f32[4,128], index: 2, kind: input, shape index: {}]   ;;  %s410_s3 = inlined_call_operand.hbm [shape: f32[8,128], index: 3, kind: output, shape index: {}]  }
   0x1   :  { %9 = vsyncpa [#allocation6], 0  ;;  %s26_s14 = sshll.u32 %s408_s1, 4  ;;  %s27_s14 = int_to_ptr.hbm [resolvable:$true] %s26_s14 }
   0x2   :  { %10 = vsyncpa [#allocation4], 0  ;;  %s369_s15 = smov [#allocation5]   ;;  %s16_s19 = sshll.u32 %s407_s0, 4  ;;  %s17_s19 = int_to_ptr.hbm [resolvable:$true] %s16_s19 }
   0x3   :  { %s28_s16 = sshll.u32 %s369_s15, 4  ;;  %s370_s20 = smov 128   ;;  %s29_s16 = int_to_ptr.vmem [resolvable:$true] %s28_s16 }
   0x4   :  { %s371_s21 = smov 8   ;;  %s372_s22 = smov [#allocation2]  }
   0x5   :  { %34 = dma.hbm_to_vmem [thread:$0]  %s27_s14, 8192, %s29_s16, [#allocation6], %s370_s20, %s370_s20, %s371_s21  }
   0x6   :  { %s18_s23 = sshll.u32 %s372_s22, 4  ;;  %s40_s26 = sshll.u32 %s409_s2, 4  ;;  %s19_s23 = int_to_ptr.vmem [resolvable:$true] %s18_s23  ;;  %s41_s26 = int_to_ptr.hbm [resolvable:$true] %s40_s26 }
   0x7   :  { %21 = dma.hbm_to_vmem [thread:$0]  %s17_s19, 128, %s19_s23, [#allocation3]  }
   0x8   :  { %s373_s1 = smov [#allocation7]  }
   0x9   :  { %s42_s27 = sshll.u32 %s373_s1, 4  ;;  %s43_s27 = int_to_ptr.vmem [resolvable:$true] %s42_s27 }
   0xa   :  { %45 = dma.hbm_to_vmem [thread:$0]  %s41_s26, 64, %s43_s27, [#allocation6]  }
   0xb   :  { %363 = dma.done.wait [#allocation3], 128  }
   0xc   :  { %364 = vsyncadd [#allocation3], 4294967168 }
   0xd   :  { %365 = dma.done.wait [#allocation6], 8256  }
   0xe   :  { %366 = vsyncadd [#allocation6], 4294959040  ;;  %v74_v0 = vld [vmem:[#allocation5 + $0x78] sm:$0xff]  ;;  %v73_v1 = vld [vmem:[#allocation5 + $0x70] sm:$0xff]  ;;  %s374_s0 = smov [#allocation8]   ;;  %s242_s30 = sshll.u32 %s410_s3, 4  ;;  %s243_s30 = int_to_ptr.hbm [resolvable:$true] %s242_s30 }
   0xf   :  { %77 = vmatpush.msra.mxu0 %v74_v0  ;;  %v72_v2 = vld [vmem:[#allocation5 + $0x68] sm:$0xff]  ;;  %v71_v3 = vld [vmem:[#allocation5 + $0x60] sm:$0xff]  ;;  %v114_v4 = vld [vmem:[#allocation5 + $0xf8] sm:$0xff]  ;;  %s240_s2 = sshll.u32 %s374_s0, 4  ;;  %s241_s2 = int_to_ptr.vmem [resolvable:$true] %s240_s2 }
  0x10   :  { %v70_v5 = vld [vmem:[#allocation5 + $0x58] sm:$0xff]  ;;  %117 = vmatpush.msra.mxu1 %v114_v4  ;;  %v113_v6 = vld [vmem:[#allocation5 + $0xf0] sm:$0xff]  ;;  %v112_v7 = vld [vmem:[#allocation5 + $0xe8] sm:$0xff] }
  0x11   :  { %78 = vmatpush.msra.mxu0 %v73_v1  ;;  %v69_v8 = vld [vmem:[#allocation5 + $0x50] sm:$0xff]  ;;  %v111_v9 = vld [vmem:[#allocation5 + $0xe0] sm:$0xff]  ;;  %v68_v10 = vld [vmem:[#allocation5 + $0x48] sm:$0xff] }
  0x12   :  { %118 = vmatpush.msra.mxu1 %v113_v6  ;;  %v110_v11 = vld [vmem:[#allocation5 + $0xd8] sm:$0xff]  ;;  %v67_v12 = vld [vmem:[#allocation5 + $0x40] sm:$0xff]  ;;  %v109_v13 = vld [vmem:[#allocation5 + $0xd0] sm:$0xff] }
  0x13   :  { %79 = vmatpush.msra.mxu0 %v72_v2  ;;  %v66_v14 = vld [vmem:[#allocation5 + $0x38] sm:$0xff]  ;;  %v108_v15 = vld [vmem:[#allocation5 + $0xc8] sm:$0xff]  ;;  %v65_v16 = vld [vmem:[#allocation5 + $0x30] sm:$0xff] }
  0x14   :  { %119 = vmatpush.msra.mxu1 %v112_v7  ;;  %v107_v17 = vld [vmem:[#allocation5 + $0xc0] sm:$0xff]  ;;  %v64_v18 = vld [vmem:[#allocation5 + $0x28] sm:$0xff]  ;;  %v106_v19 = vld [vmem:[#allocation5 + $0xb8] sm:$0xff] }
  0x15   :  { %80 = vmatpush.msra.mxu0 %v71_v3  ;;  %v63_v20 = vld [vmem:[#allocation5 + $0x20] sm:$0xff]  ;;  %v105_v21 = vld [vmem:[#allocation5 + $0xb0] sm:$0xff]  ;;  %v62_v22 = vld [vmem:[#allocation5 + $0x18] sm:$0xff] }
  0x16   :  { %120 = vmatpush.msra.mxu1 %v111_v9  ;;  %v104_v23 = vld [vmem:[#allocation5 + $0xa8] sm:$0xff]  ;;  %v61_v24 = vld [vmem:[#allocation5 + $0x10] sm:$0xff]  ;;  %v103_v25 = vld [vmem:[#allocation5 + $0xa0] sm:$0xff] }
  0x17   :  { %81 = vmatpush.msra.mxu0 %v70_v5  ;;  %v60_v26 = vld [vmem:[#allocation5 + $0x8] sm:$0xff]  ;;  %v102_v27 = vld [vmem:[#allocation5 + $0x98] sm:$0xff]  ;;  %v59_v28 = vld [vmem:[#allocation5] sm:$0xff] }
  0x18   :  { %121 = vmatpush.msra.mxu1 %v110_v11  ;;  %v58_v29 = vld [vmem:[#allocation2] sm:$0xff]  ;;  %v101_v30 = vld [vmem:[#allocation5 + $0x90] sm:$0xff]  ;;  %v100_v31 = vld [vmem:[#allocation5 + $0x88] sm:$0xff] }
  0x19   :  { %82 = vmatpush.msra.mxu0 %v69_v8  ;;  %v99_v32 = vld [vmem:[#allocation5 + $0x80] sm:$0xff]  ;;  %v154_v33 = vld [vmem:[#allocation5 + $0x178] sm:$0xff]  ;;  %v153_v34 = vld [vmem:[#allocation5 + $0x170] sm:$0xff] }
  0x1a   :  { %122 = vmatpush.msra.mxu1 %v109_v13  ;;  %157 = vmatpush.msra.mxu2 %v154_v33  ;;  %v152_v35 = vld [vmem:[#allocation5 + $0x168] sm:$0xff]  ;;  %v151_v36 = vld [vmem:[#allocation5 + $0x160] sm:$0xff]  ;;  %v150_v37 = vld [vmem:[#allocation5 + $0x158] sm:$0xff] }
  0x1b   :  { %83 = vmatpush.msra.mxu0 %v68_v10  ;;  %v149_v38 = vld [vmem:[#allocation5 + $0x150] sm:$0xff]  ;;  %v148_v39 = vld [vmem:[#allocation5 + $0x148] sm:$0xff]  ;;  %v147_v40 = vld [vmem:[#allocation5 + $0x140] sm:$0xff] }
  0x1c   :  { %123 = vmatpush.msra.mxu1 %v108_v15  ;;  %158 = vmatpush.msra.mxu2 %v153_v34  ;;  %v146_v41 = vld [vmem:[#allocation5 + $0x138] sm:$0xff]  ;;  %v145_v42 = vld [vmem:[#allocation5 + $0x130] sm:$0xff]  ;;  %v144_v43 = vld [vmem:[#allocation5 + $0x128] sm:$0xff] }
  0x1d   :  { %84 = vmatpush.msra.mxu0 %v67_v12  ;;  %v143_v44 = vld [vmem:[#allocation5 + $0x120] sm:$0xff]  ;;  %v142_v45 = vld [vmem:[#allocation5 + $0x118] sm:$0xff]  ;;  %v141_v50 = vld [vmem:[#allocation5 + $0x110] sm:$0xff] }
  0x1e   :  { %124 = vmatpush.msra.mxu1 %v107_v17  ;;  %159 = vmatpush.msra.mxu2 %v152_v35  ;;  %v259_v46 = vld [vmem:[#allocation7] ss:$0 sm:$0xff]  ;;  %v140_v51 = vld [vmem:[#allocation5 + $0x108] sm:$0xff]  ;;  %v194_v53 = vld [vmem:[#allocation5 + $0x1f8] sm:$0xff] }
  0x1f   :  { %85 = vmatpush.msra.mxu0 %v66_v14  ;;  %v139_v52 = vld [vmem:[#allocation5 + $0x100] sm:$0xff]  ;;  %v193_v54 = vld [vmem:[#allocation5 + $0x1f0] sm:$0xff]  ;;  %197 = vmatpush.msra.mxu3 %v194_v53  ;;  %v192_v55 = vld [vmem:[#allocation5 + $0x1e8] sm:$0xff] }
  0x20   :  { %125 = vmatpush.msra.mxu1 %v106_v19  ;;  %160 = vmatpush.msra.mxu2 %v151_v36  ;;  %v191_v56 = vld [vmem:[#allocation5 + $0x1e0] sm:$0xff]  ;;  %v190_v57 = vld [vmem:[#allocation5 + $0x1d8] sm:$0xff]  ;;  %v189_v58 = vld [vmem:[#allocation5 + $0x1d0] sm:$0xff] }
  0x21   :  { %86 = vmatpush.msra.mxu0 %v65_v16  ;;  %198 = vmatpush.msra.mxu3 %v193_v54  ;;  %v188_v59 = vld [vmem:[#allocation5 + $0x1c8] sm:$0xff]  ;;  %v187_v60 = vld [vmem:[#allocation5 + $0x1c0] sm:$0xff]  ;;  %v186_v61 = vld [vmem:[#allocation5 + $0x1b8] sm:$0xff] }
  0x22   :  { %126 = vmatpush.msra.mxu1 %v105_v21  ;;  %161 = vmatpush.msra.mxu2 %v150_v37  ;;  %v185_v62 = vld [vmem:[#allocation5 + $0x1b0] sm:$0xff]  ;;  %v184_v63 = vld [vmem:[#allocation5 + $0x1a8] sm:$0xff]  ;;  %v183_v0 = vld [vmem:[#allocation5 + $0x1a0] sm:$0xff] }
  0x23   :  { %87 = vmatpush.msra.mxu0 %v64_v18  ;;  %199 = vmatpush.msra.mxu3 %v192_v55  ;;  %v182_v1 = vld [vmem:[#allocation5 + $0x198] sm:$0xff]  ;;  %v260_v2 = vld [vmem:[#allocation7 + $0x1] ss:$0 sm:$0xff]  ;;  %v181_v6 = vld [vmem:[#allocation5 + $0x190] sm:$0xff] }
  0x24   :  { %127 = vmatpush.msra.mxu1 %v104_v23  ;;  %162 = vmatpush.msra.mxu2 %v149_v38  ;;  %v180_v7 = vld [vmem:[#allocation5 + $0x188] sm:$0xff]  ;;  %v179_v8 = vld [vmem:[#allocation5 + $0x180] sm:$0xff] }
  0x25   :  { %88 = vmatpush.msra.mxu0 %v63_v20  ;;  %200 = vmatpush.msra.mxu3 %v191_v56  ;;  %v261_v9 = vld [vmem:[#allocation7 + $0x2] ss:$0 sm:$0xff]  ;;  %v262_v13 = vld [vmem:[#allocation7 + $0x3] ss:$0 sm:$0xff] }
  0x26   :  { %128 = vmatpush.msra.mxu1 %v103_v25  ;;  %163 = vmatpush.msra.mxu2 %v148_v39 }
  0x27   :  { %89 = vmatpush.msra.mxu0 %v62_v22  ;;  %201 = vmatpush.msra.mxu3 %v190_v57 }
  0x28   :  { %129 = vmatpush.msra.mxu1 %v102_v27  ;;  %164 = vmatpush.msra.mxu2 %v147_v40 }
  0x29   :  { %90 = vmatpush.msra.mxu0 %v61_v24  ;;  %202 = vmatpush.msra.mxu3 %v189_v58 }
  0x2a   :  { %130 = vmatpush.msra.mxu1 %v101_v30  ;;  %165 = vmatpush.msra.mxu2 %v146_v41 }
  0x2b   :  { %91 = vmatpush.msra.mxu0 %v60_v26  ;;  %203 = vmatpush.msra.mxu3 %v188_v59 }
  0x2c   :  { %131 = vmatpush.msra.mxu1 %v100_v31  ;;  %166 = vmatpush.msra.mxu2 %v145_v42 }
  0x2d   :  { %92 = vmatpush.msra.mxu0 %v59_v28  ;;  %204 = vmatpush.msra.mxu3 %v187_v60 }
  0x2e   :  { %93 = vmatmul.f32.vlgmr.msra.gmra.mxu0 %v58_v29  ;;  %132 = vmatpush.msra.mxu1 %v99_v32 }
  0x2f   :  { %167 = vmatpush.msra.mxu2 %v144_v43  ;;  %205 = vmatpush.msra.mxu3 %v186_v61 }
  0x31   :  { %168 = vmatpush.msra.mxu2 %v143_v44  ;;  %206 = vmatpush.msra.mxu3 %v185_v62 }
  0x33   :  { %169 = vmatpush.msra.mxu2 %v142_v45  ;;  %207 = vmatpush.msra.mxu3 %v184_v63 }
  0x35   :  { %170 = vmatpush.msra.mxu2 %v141_v50  ;;  %208 = vmatpush.msra.mxu3 %v183_v0 }
  0x37   :  { %171 = vmatpush.msra.mxu2 %v140_v51  ;;  %209 = vmatpush.msra.mxu3 %v182_v1 }
  0x39   :  { %172 = vmatpush.msra.mxu2 %v139_v52  ;;  %210 = vmatpush.msra.mxu3 %v181_v6 }
  0x3b   :  { %211 = vmatpush.msra.mxu3 %v180_v7 }
  0x3d   :  { %212 = vmatpush.msra.mxu3 %v179_v8 }
  0xab   :  { %v94_v47 = vpop.f32.mrf.mxu0 }
  0xac   :  { %v95_v48 = vadd.f32 %v259_v46, %v94_v47 }
  0xae   :  { %v97_v49 = vmax.f32 %v95_v48, 0.0 }
  0xb0   :  { %133 = vmatmul.f32.vlgmr.msra.gmra.mxu1 %v97_v49 }
 0x12d   :  { %v134_v3 = vpop.f32.mrf.mxu1 }
 0x12e   :  { %v135_v4 = vadd.f32 %v260_v2, %v134_v3 }
 0x130   :  { %v137_v5 = vmax.f32 %v135_v4, 0.0 }
 0x132   :  { %173 = vmatmul.f32.vlgmr.msra.gmra.mxu2 %v137_v5 }
 0x1b5   :  { %v174_v10 = vpop.f32.mrf.mxu2 }
 0x1b6   :  { %v175_v11 = vadd.f32 %v261_v9, %v174_v10 }
 0x1b8   :  { %v177_v12 = vmax.f32 %v175_v11, 0.0 }
 0x1ba   :  { %213 = vmatmul.f32.vlgmr.msra.gmra.mxu3 %v177_v12 }
 0x23d   :  { %v214_v14 = vpop.f32.mrf.mxu3 }
 0x23e   :  { %v215_v15 = vadd.f32 %v262_v13, %v214_v14 }
 0x240   :  { %v217_v16 = vrot.slane %v215_v15, 4 }
 0x242   :  { %v218_v17 = vmax.f32 %v215_v15, %v217_v16 }
 0x244   :  { %v219_v18 = vrot.slane %v218_v17, 2 }
 0x246   :  { %v220_v19 = vmax.f32 %v218_v17, %v219_v18 }
 0x248   :  { %v221_v20 = vrot.slane %v220_v19, 1 }
 0x24a   :  { %v222_v21 = vmax.f32 %v220_v19, %v221_v20 }
 0x24c   :  { %v223_v22 = vsub.f32 %v215_v15, %v222_v21 }
 0x24e   :  { %v224_v23 = vmul.f32 1.442695, %v223_v22 }
 0x250   :  { %263 = vpow2.f32 %v224_v23 }
 0x256   :  { %v264_v24 = vpop.eup %263 }
 0x257   :  { %v226_v25 = vrot.slane %v264_v24, 4 }
 0x259   :  { %v227_v26 = vadd.f32 %v264_v24, %v226_v25 }
 0x25b   :  { %v228_v27 = vrot.slane %v227_v26, 2 }
 0x25d   :  { %v229_v28 = vadd.f32 %v228_v27, %v227_v26 }
 0x25f   :  { %v230_v29 = vrot.slane %v229_v28, 1 }
 0x261   :  { %v231_v30 = vadd.f32 %v230_v29, %v229_v28 }
 0x263   :  { %265 = vrcp.f32 %v231_v30 }
 0x269   :  { %v266_v31 = vpop.eup %265 }
 0x26a   :  { %v233_v32 = vmul.f32 %v266_v31, %v264_v24 }
 0x26c   :  { %234 = vst [vmem:[#allocation8] sm:$0xff] %v233_v32 }
 0x26d   :  { %245 = dma.vmem_to_hbm [thread:$0]  %s241_s2, 128, %s243_s30, [#allocation4]  }
 0x26e   :  { %367 = dma.done.wait [#allocation4], 128  }
 0x26f   :  { %368 = vsyncadd [#allocation4], 4294967168 }
 0x270   :  { %250 = vsyncpa [#allocation3], 1 }
 0x271   :  { %251 = vsyncpa [#allocation6], 1 }
 0x272   :  { %252 = vsyncpa [#allocation4], 1 }

</bundles_post_ra>
